<compile_context>
chip_gen: v7x
topology: tpu7x:2x2x1
jax: 0.10.0
libtpu: 0.0.40
codegen_flags: <defaults>
</compile_context>

<pallas_src>
import functools

import jax
import jax.numpy as jnp
from jax.experimental import pallas as pl
from jax.experimental.pallas import tpu as pltpu


# ---------------------------------------------------------------------------
# helpers
# ---------------------------------------------------------------------------
def _round_up(x, m):
    return ((x + m - 1) // m) * m


def _vmem_limit_bytes():
    """Per-generation VMEM budget (v7x has 64 MiB physical, v5e/v6e 128 MiB)."""
    try:
        kind = jax.devices()[0].device_kind.lower()
    except Exception:  # pragma: no cover - defensive
        kind = ""
    if "v7" in kind:
        return 48 * 1024 * 1024
    return 100 * 1024 * 1024


def _choose_tiles(num_nodes):
    """Padded node count, row tile (TM) and src-reduction tile (TK)."""
    if num_nodes <= 128:
        return 128, 128, 128
    n_pad = _round_up(num_nodes, 512)
    # Large row tile to amortize per-grid-step overhead, but always keep >= 2
    # row tiles so the "parallel" axis shards across both TCs on v7x.
    tm = min(1024, n_pad // 2)
    while n_pad % tm:
        tm -= 128
    # Big reduction tile (int8 A tile is cheap: tm x tk x 1B, double-buffered).
    tk = min(2048, n_pad)
    while n_pad % tk:
        tk -= 128
    return n_pad, tm, tk


# ---------------------------------------------------------------------------
# kernel 1: projection   H = (d_src * X) @ W   (source-side D^-1/2 folded in)
# ---------------------------------------------------------------------------
def _project_kernel(x_ref, w_ref, d_ref, o_ref):
    # bf16 x bf16 on the MXU, f32 accumulation.
    xw = jnp.dot(x_ref[...], w_ref[...], preferred_element_type=jnp.float32)
    o_ref[...] = (d_ref[...] * xw).astype(o_ref.dtype)


def project(x_bf16, w_bf16, d, *, tm, vmem_limit):
    n_pad, fin_p = x_bf16.shape
    fout_p = w_bf16.shape[1]
    return pl.pallas_call(
        _project_kernel,
        out_shape=jax.ShapeDtypeStruct((n_pad, fout_p), jnp.bfloat16),
        grid=(n_pad // tm,),
        in_specs=[
            pl.BlockSpec((tm, fin_p), lambda i: (i, 0)),
            pl.BlockSpec((fin_p, fout_p), lambda i: (0, 0)),
            pl.BlockSpec((tm, 1), lambda i: (i, 0)),
        ],
        out_specs=pl.BlockSpec((tm, fout_p), lambda i: (i, 0)),
        compiler_params=pltpu.CompilerParams(
            dimension_semantics=("parallel",),
            vmem_limit_bytes=vmem_limit,
        ),
    )(x_bf16, w_bf16, d)


# ---------------------------------------------------------------------------
# kernel 2: tiled aggregation
#   out = act(d_row * ((A+I) @ H) + b)                 (fold_next = False)
#   out = (d_row * act(d_row * ((A+I) @ H) + b)) @ W2  (fold_next = True,
#          i.e. the next layer's source-side D^-1/2 and projection are fused
#          into the finalize step)
# ---------------------------------------------------------------------------
def _make_aggregate_kernel(*, apply_relu, fold_next, resident_h, tk):
    def body(a_ref, h_ref, d_ref, b_ref, w_ref, o_ref, acc_ref):
        k = pl.program_id(1)

        @pl.when(k == 0)
        def _():
            acc_ref[...] = jnp.zeros_like(acc_ref)

        # int8 adjacency tile in HBM/VMEM, cast to bf16 just before the MXU.
        a_tile = a_ref[...].astype(jnp.bfloat16)
        if resident_h:
            start = pl.multiple_of(k * tk, tk)
            h_tile = h_ref[pl.ds(start, tk), :]
        else:
            h_tile = h_ref[...]
        acc_ref[...] += jnp.dot(a_tile, h_tile,
                                preferred_element_type=jnp.float32)

        @pl.when(k == pl.num_programs(1) - 1)
        def _():
            out = d_ref[...] * acc_ref[...] + b_ref[...]
            if apply_relu:
                out = jnp.maximum(out, 0.0)
            if fold_next:
                # next layer's H = (d_src * act) @ W_next, written directly.
                h_next = (d_ref[...] * out).astype(jnp.bfloat16)
                out = jnp.dot(h_next, w_ref[...],
                              preferred_element_type=jnp.float32)
            o_ref[...] = out.astype(o_ref.dtype)

    if fold_next:
        def kernel(a_ref, h_ref, d_ref, b_ref, w_ref, o_ref, acc_ref):
            body(a_ref, h_ref, d_ref, b_ref, w_ref, o_ref, acc_ref)
    else:
        def kernel(a_ref, h_ref, d_ref, b_ref, o_ref, acc_ref):
            body(a_ref, h_ref, d_ref, b_ref, None, o_ref, acc_ref)
    return kernel


def aggregate(adj_i8, h_bf16, d, bias2d, *, tm, tk, apply_relu, vmem_limit,
              w_next=None, out_dtype=jnp.float32):
    n_pad = adj_i8.shape[0]
    f_in = h_bf16.shape[1]
    fold_next = w_next is not None
    f_out = w_next.shape[1] if fold_next else f_in

    # Keep H fully VMEM-resident (DMA'd once) when its double-buffered block
    # comfortably fits the per-generation budget; otherwise fall back to tiles.
    resident_h = 2 * n_pad * f_in * 2 <= min(vmem_limit // 3, 24 * 1024 * 1024)

    kernel = _make_aggregate_kernel(apply_relu=apply_relu,
                                    fold_next=fold_next,
                                    resident_h=resident_h, tk=tk)

    if resident_h:
        h_spec = pl.BlockSpec((n_pad, f_in), lambda i, k: (0, 0))
    else:
        h_spec = pl.BlockSpec((tk, f_in), lambda i, k: (k, 0))

    in_specs = [
        pl.BlockSpec((tm, tk), lambda i, k: (i, k)),   # A[dst, src] tile (int8)
        h_spec,                                        # H src-row block (bf16)
        pl.BlockSpec((tm, 1), lambda i, k: (i, 0)),    # d_inv_sqrt (dst rows)
        pl.BlockSpec((1, f_in), lambda i, k: (0, 0)),  # bias (this layer)
    ]
    args = [adj_i8, h_bf16, d, bias2d]
    if fold_next:
        in_specs.append(pl.BlockSpec((f_in, f_out), lambda i, k: (0, 0)))
        args.append(w_next)

    return pl.pallas_call(
        kernel,
        out_shape=jax.ShapeDtypeStruct((n_pad, f_out), out_dtype),
        grid=(n_pad // tm, n_pad // tk),
        in_specs=in_specs,
        out_specs=pl.BlockSpec((tm, f_out), lambda i, k: (i, 0)),
        scratch_shapes=[pltpu.VMEM((tm, f_in), jnp.float32)],
        compiler_params=pltpu.CompilerParams(
            dimension_semantics=("parallel", "arbitrary"),
            vmem_limit_bytes=vmem_limit,
        ),
    )(*args)


# ---------------------------------------------------------------------------
# adjacency construction (data-dependent scatter: stays in plain JAX)
# ---------------------------------------------------------------------------
def build_adjacency(edge_index, num_nodes, padded_nodes):
    """Dense unnormalized (A + remaining self-loops) as int8 and D^-1/2."""
    src = edge_index[0]
    dst = edge_index[1]
    ones = jnp.ones(src.shape, jnp.int32)

    # Dense adjacency built once at padded size (padded rows/cols stay zero).
    # NOTE: int8 is exact up to 127 parallel edges per (dst, src) pair.
    adj = jnp.zeros((padded_nodes, padded_nodes), jnp.int32)
    adj = adj.at[dst, src].add(ones)

    # add_remaining_self_loops (PyG): only where no self-loop exists already.
    node_idx = jnp.arange(num_nodes, dtype=jnp.int32)
    existing_self = jnp.zeros((padded_nodes,), jnp.int32).at[dst].add(
        (src == dst).astype(jnp.int32))
    remaining = jnp.where(existing_self[:num_nodes] > 0, 0, 1)
    adj = adj.at[node_idx, node_idx].add(remaining)

    # Target-node degrees via O(E) scatter counts (no dense N^2 row-sum).
    deg = jnp.zeros((padded_nodes,), jnp.int32).at[dst].add(ones)
    deg = deg.at[node_idx].add(remaining)
    deg_f = deg.astype(jnp.float32)
    d_inv_sqrt = jnp.where(deg_f > 0, jax.lax.rsqrt(deg_f), 0.0)

    return adj.astype(jnp.int8), d_inv_sqrt.reshape(padded_nodes, 1)


# ---------------------------------------------------------------------------
# full GCN forward:  out = Â relu(Â X W1 + b1) W2 + b2,  Â = D^-1/2 (A+I) D^-1/2
# ---------------------------------------------------------------------------
def gcn_forward(x, edge_index, params):
    n, fin = x.shape
    hid = params["w1"].shape[1]
    out_ch = params["w2"].shape[1]

    n_pad, tm, tk = _choose_tiles(n)
    vmem_limit = _vmem_limit_bytes()

    fin_p = _round_up(fin, 128)
    hid_p = _round_up(hid, 128)
    out_p = _round_up(out_ch, 128)

    adj_i8, d = build_adjacency(edge_index, n, n_pad)

    # lane-dense (128-padded) bf16 operands; padding is zero so results exact.
    x_p = jnp.pad(x, ((0, n_pad - n), (0, fin_p - fin))).astype(jnp.bfloat16)
    w1_p = jnp.pad(params["w1"], ((0, fin_p - fin), (0, hid_p - hid))
                   ).astype(jnp.bfloat16)
    b1_p = jnp.pad(params["b1"], (0, hid_p - hid)).reshape(1, hid_p)
    w2_p = jnp.pad(params["w2"], ((0, hid_p - hid), (0, out_p - out_ch))
                   ).astype(jnp.bfloat16)
    b2_p = jnp.pad(params["b2"], (0, out_p - out_ch)).reshape(1, out_p)

    # layer-1 projection: H1 = (D^-1/2 X) W1
    h1 = project(x_p, w1_p, d, tm=tm, vmem_limit=vmem_limit)

    # fused layer-1 aggregate + layer-2 projection:
    #   H2 = D^-1/2 * relu(D^-1/2 (A+I) H1 + b1) @ W2   (bf16, no N x hid trip)
    h2 = aggregate(adj_i8, h1, d, b1_p, tm=tm, tk=tk, apply_relu=True,
                   vmem_limit=vmem_limit, w_next=w2_p, out_dtype=jnp.bfloat16)

    # layer-2 aggregate: out = D^-1/2 (A+I) H2 + b2      (f32 final output)
    out = aggregate(adj_i8, h2, d, b2_p, tm=tm, tk=tk, apply_relu=False,
                    vmem_limit=vmem_limit, out_dtype=jnp.float32)

    return out[:n, :out_ch]


def init_params(key, in_channels, hidden_channels, out_channels):
    k1, k2 = jax.random.split(key)

    # GCNConv: glorot weights, zero bias; stored [in, out] so kernels do X @ W.
    def glorot(k, fan_in, fan_out):
        limit = jnp.sqrt(6.0 / (fan_in + fan_out))
        return jax.random.uniform(k, (fan_in, fan_out), jnp.float32, -limit, limit)

    return {
        "w1": glorot(k1, in_channels, hidden_channels),
        "b1": jnp.zeros((hidden_channels,), jnp.float32),
        "w2": glorot(k2, hidden_channels, out_channels),
        "b2": jnp.zeros((out_channels,), jnp.float32),
    }


if __name__ == "__main__":
    key = jax.random.PRNGKey(0)
    k_x, k_e, k_p = jax.random.split(key, 3)

    num_nodes = 16
    in_channels = 4
    hidden_channels = 32
    out_channels = 8
    num_edges = 40

    x = jax.random.normal(k_x, (num_nodes, in_channels), jnp.float32)
    edge_index = jax.random.randint(
        k_e, (2, num_edges), minval=0, maxval=num_nodes, dtype=jnp.int32
    )
    params = init_params(k_p, in_channels, hidden_channels, out_channels)

    out = gcn_forward(x, edge_index, params)
    out = jax.block_until_ready(out)

    assert out.shape == (num_nodes, out_channels)
    assert out.dtype == jnp.float32
    print("KERNEL_OK")
</pallas_src>

<mosaic_0001>
module attributes {stable_mosaic.version = 11 : i64} {
  func.func @_project_kernel(%arg0: i32, %arg1: memref<128x128xbf16, #tpu.memory_space<vmem>>, %arg2: memref<128x128xbf16, #tpu.memory_space<vmem>>, %arg3: memref<128x1xf32, #tpu.memory_space<vmem>>, %arg4: memref<128x128xbf16, #tpu.memory_space<vmem>>) attributes {dimension_semantics = [#tpu.dimension_semantics<parallel>], iteration_bounds = array<i64: 1>, scalar_prefetch = 0 : i64, scratch_operands = 0 : i64, tpu.core_type = #tpu.core_type<tc>, window_params = [{transform_indices = @transform_0, window_bounds = array<i64: 128, 128>}, {pipeline_mode = #tpu.pipeline_mode<synchronous>, transform_indices = @transform_1, window_bounds = array<i64: 128, 128>}, {transform_indices = @transform_2, window_bounds = array<i64: 128, 1>}, {transform_indices = @transform_3, window_bounds = array<i64: 128, 128>}]} {
    %c0 = arith.constant 0 : index
    %c0_0 = arith.constant 0 : index
    %0 = vector.load %arg1[%c0, %c0_0] : memref<128x128xbf16, #tpu.memory_space<vmem>>, vector<128x128xbf16>
    %c0_1 = arith.constant 0 : index
    %c0_2 = arith.constant 0 : index
    %1 = vector.load %arg2[%c0_1, %c0_2] : memref<128x128xbf16, #tpu.memory_space<vmem>>, vector<128x128xbf16>
    %cst = arith.constant dense<0.000000e+00> : vector<128x128xf32>
    %2 = tpu.matmul %0, %1, %cst {dimension_numbers = #tpu.dot_dimension_numbers<[1], [0], [0], [1], [0, 0, 1, 1], [], []>} : vector<128x128xbf16>, vector<128x128xbf16>, vector<128x128xf32> -> vector<128x128xf32>
    %c0_3 = arith.constant 0 : index
    %c0_4 = arith.constant 0 : index
    %3 = vector.load %arg3[%c0_3, %c0_4] : memref<128x1xf32, #tpu.memory_space<vmem>>, vector<128x1xf32>
    %4 = vector.broadcast %3 : vector<128x1xf32> to vector<128x128xf32>
    %5 = arith.mulf %4, %2 : vector<128x128xf32>
    %6 = arith.truncf %5 : vector<128x128xf32> to vector<128x128xbf16>
    %c0_5 = arith.constant 0 : index
    %c0_6 = arith.constant 0 : index
    %7 = vector.load %arg4[%c0_5, %c0_6] : memref<128x128xbf16, #tpu.memory_space<vmem>>, vector<128x128xbf16>
    tpu.vector_store %arg4[%c0_5, %c0_6], %6 {strides = array<i32>} : memref<128x128xbf16, #tpu.memory_space<vmem>>, vector<128x128xbf16>,
    return
  }
  func.func @transform_0(%arg0: i32) -> (i32, i32) {
    %c0_i32 = arith.constant 0 : i32
    %c0_i32_0 = arith.constant 0 : i32
    return %arg0, %c0_i32 : i32, i32
  }
  func.func @transform_1(%arg0: i32) -> (i32, i32) {
    %c0_i32 = arith.constant 0 : i32
    %c0_i32_0 = arith.constant 0 : i32
    %c0_i32_1 = arith.constant 0 : i32
    return %c0_i32, %c0_i32_0 : i32, i32
  }
  func.func @transform_2(%arg0: i32) -> (i32, i32) {
    %c0_i32 = arith.constant 0 : i32
    %c0_i32_0 = arith.constant 0 : i32
    return %arg0, %c0_i32 : i32, i32
  }
  func.func @transform_3(%arg0: i32) -> (i32, i32) {
    %c0_i32 = arith.constant 0 : i32
    %c0_i32_0 = arith.constant 0 : i32
    return %arg0, %c0_i32 : i32, i32
  }
}

</mosaic_0001>

<bundles_post_ra>
// kernel: tpu_custom_call.1
= control target key start
LH: loop header
LB: loop body
LE: loop exit
PB: predicated region body
PF: predicated region fallthrough
CT: control target
= control target key end

     0   :  { %8 = vsyncpa [#allocation3], 0  ;;  %s865_s0 = inlined_call_operand.hbm [shape: bf16[128,128], index: 0, kind: input, shape index: {}]   ;;  %s866_s1 = inlined_call_operand.hbm [shape: bf16[128,128], index: 1, kind: input, shape index: {}]   ;;  %s867_s2 = inlined_call_operand.hbm [shape: f32[128,1], index: 2, kind: input, shape index: {}]   ;;  %s868_s3 = inlined_call_operand.hbm [shape: bf16[128,128], index: 3, kind: output, shape index: {}]  }
   0x1   :  { %9 = vsyncpa [#allocation6], 0 }
   0x2   :  { %10 = vsyncpa [#allocation4], 0  ;;  %s772_s12 = smov [#allocation5]   ;;  %s773_s14 = smov [#allocation2]  }
   0x3   :  { %s28_s13 = sshll.u32 %s772_s12, 4  ;;  %s16_s15 = sshll.u32 %s773_s14, 4  ;;  %s29_s13 = int_to_ptr.vmem [resolvable:$true] %s28_s13  ;;  %s801_s15 = int_to_ptr.vmem [resolvable:$true] %s16_s15 }
   0x4   :  { %s678_s18 = scalar_lea.hbm %s866_s1, 1024 }
   0x5   :  { %p679_p0 = scmp.ne.s32.totalorder %s866_s1, %s678_s18  ;;  %p682_p1 = scmp.lt.u32.totalorder %s678_s18, %s866_s1 }
   0x7   :  { %p684_p2 = pnand %p682_p1, %p679_p0 }
   0x9   :  { %687 = shalt.err (!%p684_p2)
}
   0xa   :  { %s688_s23 = scalar_lea.vmem %s29_s13, 1024  ;;  %p693_p4 = scmp.lt.s32.totalorder %s29_s13, %s29_s13 }
   0xb   :  { %p689_p3 = scmp.ne.s32.totalorder %s29_s13, %s688_s23  ;;  %p694_p5 = scmp.lt.s32.totalorder %s688_s23, %s688_s23 }
   0xd   :  { %p695_p6 = por %p694_p5, %p693_p4 }
   0xf   :  { %p696_p7 = pnand %p695_p6, %p689_p3 }
  0x11   :  { %699 = shalt.err (!%p696_p7)
}
  0x12   :  { %s774_s24 = smov 64   ;;  %s775_s25 = smov 4  }
  0x13   :  { %34 = dma.hbm_to_vmem [thread:$0]  %s866_s1, 1024, %s29_s13, [#allocation6], %s774_s24, %s774_s24, %s775_s25  }
  0x14   :  { %s700_s30 = scalar_lea.hbm %s865_s0, 1024 }
  0x15   :  { %p701_p8 = scmp.ne.s32.totalorder %s865_s0, %s700_s30  ;;  %p704_p9 = scmp.lt.u32.totalorder %s700_s30, %s865_s0 }
  0x17   :  { %p706_p10 = pnand %p704_p9, %p701_p8 }
  0x19   :  { %709 = shalt.err (!%p706_p10)
}
  0x1a   :  { %s710_s8 = scalar_lea.vmem %s801_s15, 1024  ;;  %p715_p12 = scmp.lt.s32.totalorder %s801_s15, %s801_s15 }
  0x1b   :  { %p711_p11 = scmp.ne.s32.totalorder %s801_s15, %s710_s8  ;;  %p716_p13 = scmp.lt.s32.totalorder %s710_s8, %s710_s8 }
  0x1d   :  { %p717_p0 = por %p716_p13, %p715_p12 }
  0x1f   :  { %p718_p1 = pnand %p717_p0, %p711_p11 }
  0x21   :  { %721 = shalt.err (!%p718_p1)
}
  0x22   :  { %22 = dma.hbm_to_vmem [thread:$0]  %s865_s0, 1024, %s801_s15, [#allocation3], %s774_s24, %s774_s24, %s775_s25  }
  0x23   :  { %s776_s10 = smov [#allocation7]   ;;  %s722_s14 = scalar_lea.hbm %s867_s2, 2048 }
  0x24   :  { %s40_s11 = sshll.u32 %s776_s10, 4  ;;  %p723_p2 = scmp.ne.s32.totalorder %s867_s2, %s722_s14  ;;  %s41_s11 = int_to_ptr.vmem [resolvable:$true] %s40_s11 }
  0x25   :  { %p726_p3 = scmp.lt.u32.totalorder %s722_s14, %s867_s2 }
  0x27   :  { %p728_p4 = pnand %p726_p3, %p723_p2 }
  0x29   :  { %731 = shalt.err (!%p728_p4)
}
  0x2a   :  { %s732_s20 = scalar_lea.vmem %s41_s11, 2048  ;;  %p737_p6 = scmp.lt.s32.totalorder %s41_s11, %s41_s11 }
  0x2b   :  { %p733_p5 = scmp.ne.s32.totalorder %s41_s11, %s732_s20  ;;  %p738_p7 = scmp.lt.s32.totalorder %s732_s20, %s732_s20 }
  0x2d   :  { %p739_p8 = por %p738_p7, %p737_p6 }
  0x2f   :  { %p740_p9 = pnand %p739_p8, %p733_p5 }
  0x31   :  { %743 = shalt.err (!%p740_p9)
}
  0x32   :  { %s777_s0 = smov 128   ;;  %s778_s15 = smov 8  }
  0x33   :  { %46 = dma.hbm_to_vmem [thread:$0]  %s867_s2, 2048, %s41_s11, [#allocation6], %s777_s0, %s777_s0, %s778_s15  }
  0x34   :  { %766 = dma.done.wait [#allocation3], 1024  }
  0x35   :  { %767 = vsyncadd [#allocation3], 4294966272 }
  0x36   :  { %768 = dma.done.wait [#allocation6], 3072  }
  0x37   :  { %769 = vsyncadd [#allocation6], 4294964224  ;;  %v779_v0 = vmov 0   ;;  %v662_v1 = vld [vmem:[#allocation5] sm:$0xff]   ;;  %v663_v2 = vld [vmem:[#allocation5 + $0x8] sm:$0xff]   ;;  %s780_s2 = smov [#allocation8]  }
  0x38   :  { %661 = vset.pattern.permute.xlu1 %v779_v0  ;;  %660 = vset.pattern.permute.xlu0 %v779_v0  ;;  %v664_v3 = vld [vmem:[#allocation5 + $0x10] sm:$0xff]   ;;  %v665_v4 = vld [vmem:[#allocation5 + $0x18] sm:$0xff]   ;;  %v670_v5 = vld [vmem:[#allocation2] sm:$0xff]   ;;  %s479_s23 = sshll.u32 %s780_s2, 4  ;;  %s480_s23 = int_to_ptr.vmem [resolvable:$true] %s479_s23 }
  0x39   :  { %603 = vmatprep.subr.bf16.mxu0 %v662_v1  ;;  %635 = vmatprep.subr.bf16.mxu1 %v662_v1  ;;  %v671_v6 = vld [vmem:[#allocation2 + $0x20] sm:$0xff]   ;;  %v667_v8 = vld [vmem:[#allocation5 + $0x28] sm:$0xff]   ;;  %v284_v9 = vld [vmem:[#allocation7 + $0x10] sm:$0xff]  ;;  %s744_s26 = scalar_lea.vmem %s480_s23, 1024  ;;  %p749_p11 = scmp.lt.s32.totalorder %s480_s23, %s480_s23 }
  0x3a   :  { %604 = vmatpush3.bf16.msra.mxu0 %v662_v1  ;;  %643 = vmatpush3.bf16.msra.mxu1 %v662_v1  ;;  %v666_v7 = vld [vmem:[#allocation5 + $0x20] sm:$0xff]   ;;  %v285_v11 = vld [vmem:[#allocation7 + $0x18] sm:$0xff]  ;;  %v283_v12 = vld [vmem:[#allocation7 + $0x8] sm:$0xff]  ;;  %p745_p10 = scmp.ne.s32.totalorder %s480_s23, %s744_s26  ;;  %p750_p12 = scmp.lt.s32.totalorder %s744_s26, %s744_s26 }
  0x3b   :  { %605 = vmatprep.subr.bf16.mxu0 %v663_v2  ;;  %636 = vmatprep.subr.bf16.mxu1 %v663_v2  ;;  %v282_v10 = vld [vmem:[#allocation7] sm:$0xff]  ;;  %v668_v13 = vld [vmem:[#allocation5 + $0x30] sm:$0xff]   ;;  %v287_v14 = vld [vmem:[#allocation7 + $0x28] sm:$0xff] }
  0x3c   :  { %619 = vmatprep.mubr.bf16.mxu0 %v670_v5  ;;  %627 = vmatprep.mubr.bf16.mxu1 %v671_v6  ;;  %v286_v15 = vld [vmem:[#allocation7 + $0x20] sm:$0xff]  ;;  %v669_v16 = vld [vmem:[#allocation5 + $0x38] sm:$0xff]   ;;  %v288_v18 = vld [vmem:[#allocation7 + $0x30] sm:$0xff]  ;;  %p751_p13 = por %p750_p12, %p749_p11 }
  0x3d   :  { %310 = vperm.xlu1 %661, %v284_v9   ;;  %300 = vperm.xlu0 %660, %v282_v10   ;;  %v289_v17 = vld [vmem:[#allocation7 + $0x38] sm:$0xff]  ;;  %v672_v19 = vld [vmem:[#allocation2 + $0x8] sm:$0xff]   ;;  %v290_v22 = vld [vmem:[#allocation7 + $0x40] sm:$0xff] }
  0x3e   :  { %606 = vmatpush3.bf16.msra.mxu0 %v663_v2  ;;  %644 = vmatpush3.bf16.msra.mxu1 %v663_v2  ;;  %v673_v20 = vld [vmem:[#allocation2 + $0x28] sm:$0xff]   ;;  %v674_v23 = vld [vmem:[#allocation2 + $0x10] sm:$0xff]   ;;  %v293_v25 = vld [vmem:[#allocation7 + $0x58] sm:$0xff]  ;;  %p752_p0 = pnand %p751_p13, %p745_p10 }
  0x3f   :  { %607 = vmatprep.subr.bf16.mxu0 %v664_v3  ;;  %637 = vmatprep.subr.bf16.mxu1 %v664_v3  ;;  %v291_v21 = vld [vmem:[#allocation7 + $0x48] sm:$0xff]  ;;  %v675_v24 = vld [vmem:[#allocation2 + $0x30] sm:$0xff]   ;;  %v676_v27 = vld [vmem:[#allocation2 + $0x18] sm:$0xff]  }
  0x40   :  { %v292_v26 = vld [vmem:[#allocation7 + $0x50] sm:$0xff]  ;;  %v677_v28 = vld [vmem:[#allocation2 + $0x38] sm:$0xff]   ;;  %v295_v29 = vld [vmem:[#allocation7 + $0x68] sm:$0xff] }
  0x41   :  { %315 = vperm.xlu1 %661, %v285_v11   ;;  %305 = vperm.xlu0 %660, %v283_v12   ;;  %v294_v30 = vld [vmem:[#allocation7 + $0x60] sm:$0xff]  ;;  %v297_v31 = vld [vmem:[#allocation7 + $0x78] sm:$0xff]  ;;  %v296_v32 = vld [vmem:[#allocation7 + $0x70] sm:$0xff] }
  0x42   :  { %608 = vmatpush3.bf16.msra.mxu0 %v664_v3  ;;  %645 = vmatpush3.bf16.msra.mxu1 %v664_v3 }
  0x43   :  { %609 = vmatprep.subr.bf16.mxu0 %v665_v4  ;;  %638 = vmatprep.subr.bf16.mxu1 %v665_v4 }
  0x45   :  { %325 = vperm.xlu1 %661, %v287_v14   ;;  %320 = vperm.xlu0 %660, %v286_v15  }
  0x46   :  { %610 = vmatpush3.bf16.msra.mxu0 %v665_v4  ;;  %646 = vmatpush3.bf16.msra.mxu1 %v665_v4 }
  0x47   :  { %611 = vmatprep.subr.bf16.mxu0 %v666_v7  ;;  %639 = vmatprep.subr.bf16.mxu1 %v666_v7 }
  0x49   :  { %335 = vperm.xlu1 %661, %v289_v17   ;;  %330 = vperm.xlu0 %660, %v288_v18  }
  0x4a   :  { %612 = vmatpush3.bf16.msra.mxu0 %v666_v7  ;;  %647 = vmatpush3.bf16.msra.mxu1 %v666_v7 }
  0x4b   :  { %613 = vmatprep.subr.bf16.mxu0 %v667_v8  ;;  %640 = vmatprep.subr.bf16.mxu1 %v667_v8 }
  0x4d   :  { %345 = vperm.xlu1 %661, %v291_v21   ;;  %340 = vperm.xlu0 %660, %v290_v22  }
  0x4e   :  { %614 = vmatpush3.bf16.msra.mxu0 %v667_v8  ;;  %648 = vmatpush3.bf16.msra.mxu1 %v667_v8 }
  0x4f   :  { %615 = vmatprep.subr.bf16.mxu0 %v668_v13  ;;  %641 = vmatprep.subr.bf16.mxu1 %v668_v13 }
  0x51   :  { %355 = vperm.xlu1 %661, %v293_v25   ;;  %350 = vperm.xlu0 %660, %v292_v26  }
  0x52   :  { %616 = vmatpush3.bf16.msra.mxu0 %v668_v13  ;;  %649 = vmatpush3.bf16.msra.mxu1 %v668_v13 }
  0x53   :  { %617 = vmatprep.subr.bf16.mxu0 %v669_v16  ;;  %642 = vmatprep.subr.bf16.mxu1 %v669_v16 }
  0x55   :  { %365 = vperm.xlu1 %661, %v295_v29   ;;  %360 = vperm.xlu0 %660, %v294_v30  }
  0x56   :  { %618 = vmatpush3.bf16.msra.mxu0 %v669_v16  ;;  %650 = vmatpush3.bf16.msra.mxu1 %v669_v16 }
  0x59   :  { %620 = vmatmul.mubr.bf16.vlgmr.msra.gmra.mrb[0].mxu0 %v672_v19  ;;  %628 = vmatmul.mubr.bf16.vlgmr.msra.gmra.mrb[0].mxu1 %v673_v20 }
  0x5a   :  { %623 = vmatprep.mubr.bf16.mxu0 %v674_v23  ;;  %631 = vmatprep.mubr.bf16.mxu1 %v675_v24 }
  0x5b   :  { %375 = vperm.xlu1 %661, %v297_v31   ;;  %370 = vperm.xlu0 %660, %v296_v32  }
  0x61   :  { %624 = vmatmul.mubr.bf16.gmra.mrb[4].mxu0 %v676_v27  ;;  %632 = vmatmul.mubr.bf16.gmra.mrb[4].mxu1 %v677_v28 }
  0xbc   :  { %v311_v33 = vpop.permute.xlu1 %310  ;;  %v301_v34 = vpop.permute.xlu0 %300 }
  0xc0   :  { %v316_v35 = vpop.permute.xlu1 %315  ;;  %v306_v36 = vpop.permute.xlu0 %305 }
  0xc4   :  { %v326_v37 = vpop.permute.xlu1 %325  ;;  %v321_v38 = vpop.permute.xlu0 %320 }
  0xc8   :  { %v336_v39 = vpop.permute.xlu1 %335  ;;  %v331_v40 = vpop.permute.xlu0 %330 }
  0xcc   :  { %v346_v41 = vpop.permute.xlu1 %345  ;;  %v341_v42 = vpop.permute.xlu0 %340 }
  0xd0   :  { %v356_v43 = vpop.permute.xlu1 %355  ;;  %v351_v44 = vpop.permute.xlu0 %350 }
  0xd4   :  { %v366_v45 = vpop.permute.xlu1 %365  ;;  %v361_v46 = vpop.permute.xlu0 %360 }
  0xda   :  { %v376_v3 = vpop.permute.xlu1 %375  ;;  %v371_v4 = vpop.permute.xlu0 %370 }
 0x12c   :  { %v621_v47 = vpop.f32.mrb[0].mxu0  ;;  %v629_v48 = vpop.f32.mrb[0].mxu1 }
 0x12d   :  { %v219_v49 = vpop.f32.mrb[1].mxu0  ;;  %v251_v50 = vpop.f32.mrb[1].mxu1  ;;  %v380_v53 = vmul.f32 %v621_v47, %v311_v33  ;;  %v388_v54 = vmul.f32 %v629_v48, %v351_v44 }
 0x12e   :  { %v622_v51 = vpop.f32.mrb[2].mxu0  ;;  %v630_v52 = vpop.f32.mrb[2].mxu1  ;;  %v378_v59 = vmul.f32 %v301_v34, %v219_v49  ;;  %v386_v60 = vmul.f32 %v341_v42, %v251_v50 }
 0x12f   :  { %v381_v55 = vmul.f32 %v622_v51, %v316_v35  ;;  %v389_v56 = vmul.f32 %v630_v52, %v356_v43  ;;  %v222_v57 = vpop.f32.mrb[3].mxu0  ;;  %v254_v58 = vpop.f32.mrb[3].mxu1 }
 0x130   :  { %v379_v61 = vmul.f32 %v306_v36, %v222_v57  ;;  %v387_v62 = vmul.f32 %v346_v41, %v254_v58 }
 0x131   :  { %v548_v63 = vpack.c.bf16 %v381_v55, %v380_v53  ;;  %v568_v0 = vpack.c.bf16 %v389_v56, %v388_v54 }
 0x132   :  { %v543_v1 = vpack.c.bf16 %v379_v61, %v378_v59  ;;  %v563_v2 = vpack.c.bf16 %v387_v62, %v386_v60 }
 0x133   :  { %580 = vst [vmem:[#allocation8 + $0x8] sm:$0xff] %v548_v63   ;;  %584 = vst [vmem:[#allocation8 + $0x28] sm:$0xff] %v568_v0  }
 0x134   :  { %544 = vst [vmem:[#allocation8] sm:$0xff] %v543_v1   ;;  %583 = vst [vmem:[#allocation8 + $0x20] sm:$0xff] %v563_v2   ;;  %v625_v5 = vpop.f32.mrb[4].mxu0  ;;  %v633_v6 = vpop.f32.mrb[4].mxu1 }
 0x135   :  { %v235_v7 = vpop.f32.mrb[5].mxu0  ;;  %v267_v8 = vpop.f32.mrb[5].mxu1  ;;  %v384_v11 = vmul.f32 %v625_v5, %v331_v40  ;;  %v392_v12 = vmul.f32 %v633_v6, %v371_v4 }
 0x136   :  { %v626_v9 = vpop.f32.mrb[6].mxu0  ;;  %v634_v10 = vpop.f32.mrb[6].mxu1  ;;  %v382_v17 = vmul.f32 %v321_v38, %v235_v7  ;;  %v390_v18 = vmul.f32 %v361_v46, %v267_v8 }
 0x137   :  { %v385_v13 = vmul.f32 %v626_v9, %v336_v39  ;;  %v393_v14 = vmul.f32 %v634_v10, %v376_v3  ;;  %v238_v15 = vpop.f32.mrb[7].mxu0  ;;  %v270_v16 = vpop.f32.mrb[7].mxu1 }
 0x138   :  { %v383_v19 = vmul.f32 %v326_v37, %v238_v15  ;;  %v391_v20 = vmul.f32 %v366_v45, %v270_v16 }
 0x139   :  { %v558_v21 = vpack.c.bf16 %v385_v13, %v384_v11  ;;  %v578_v22 = vpack.c.bf16 %v393_v14, %v392_v12 }
 0x13a   :  { %v553_v23 = vpack.c.bf16 %v383_v19, %v382_v17  ;;  %v573_v24 = vpack.c.bf16 %v391_v20, %v390_v18 }
 0x13b   :  { %582 = vst [vmem:[#allocation8 + $0x18] sm:$0xff] %v558_v21   ;;  %586 = vst [vmem:[#allocation8 + $0x38] sm:$0xff] %v578_v22  }
 0x13c   :  { %581 = vst [vmem:[#allocation8 + $0x10] sm:$0xff] %v553_v23   ;;  %585 = vst [vmem:[#allocation8 + $0x30] sm:$0xff] %v573_v24  }
 0x13d   :  { %755 = shalt.err (!%p752_p0)
}
 0x13e   :  { %s756_s29 = scalar_lea.hbm %s868_s3, 1024 }
 0x13f   :  { %p757_p1 = scmp.ne.s32.totalorder %s868_s3, %s756_s29  ;;  %p760_p2 = scmp.lt.u32.totalorder %s756_s29, %s868_s3 }
 0x141   :  { %p762_p3 = pnand %p760_p2, %p757_p1 }
 0x143   :  { %765 = shalt.err (!%p762_p3)
}
 0x144   :  { %485 = dma.vmem_to_hbm [thread:$0]  %s480_s23, 1024, %s868_s3, [#allocation4], %s774_s24, %s774_s24, %s775_s25  }
 0x145   :  { %770 = dma.done.wait [#allocation4], 1024  }
 0x146   :  { %771 = vsyncadd [#allocation4], 4294966272 }
 0x147   :  { %489 = vsyncpa [#allocation3], 1 }
 0x148   :  { %490 = vsyncpa [#allocation6], 1 }
 0x149   :  { %491 = vsyncpa [#allocation4], 1 }

</bundles_post_ra>
